<compile_context>
chip_gen: v7x
topology: tpu7x:2x2x1
jax: 0.10.0
libtpu: 0.0.40
codegen_flags: <defaults>
</compile_context>

<pallas_src>
import functools
import math

import jax
import jax.numpy as jnp
from jax.experimental import pallas as pl
from jax.experimental.pallas import tpu as pltpu


# ----------------------------------------------------------------------------- helpers
def _round_up(x, m):
    return ((x + m - 1) // m) * m


def _tpu_generation():
    try:
        kind = jax.devices()[0].device_kind.lower()
    except Exception:
        return "unknown"
    if "v5 lite" in kind or "v5e" in kind or "v5litepod" in kind:
        return "v5e"
    if "v6" in kind:
        return "v6e"
    if "v7" in kind:
        return "v7x"
    return "other"


def _sublane(dtype):
    # Native TPU tiles: (8,128) for 32-bit, (16,128) for 16-bit, (32,128) for 8-bit.
    return max(8, 32 // jnp.dtype(dtype).itemsize)


def _blockdiag_tri(groups, length, inclusive, dtype=jnp.bfloat16):
    """(groups*length)^2 block-diagonal lower-triangular 0/1 matrix (exact in bf16)."""
    n = groups * length
    r = jnp.arange(n)[:, None]
    c = jnp.arange(n)[None, :]
    same = (r // length) == (c // length)
    keep = (r % length >= c % length) if inclusive else (r % length > c % length)
    return (same & keep).astype(dtype)


def _select_tf(F, block_f, row_parallel_blocks, gen):
    tf = F if F <= block_f else max(128, (block_f // 128) * 128)
    # v7x has two TensorCores: make sure the parallel grid axes expose >= 2 blocks.
    if gen == "v7x" and F >= 256 and row_parallel_blocks * pl.cdiv(F, tf) < 2:
        tf = min(tf, _round_up(pl.cdiv(F, 2), 128))
    return tf


# ----------------------------------------------------------------------------- kernel bodies
def _masked_rows(x, grid_axis, valid_rows):
    """Zero out rows past `valid_rows` (statically gated; guards garbage from
    partial boundary-block reads so 0*NaN cannot poison the MXU accumulation)."""
    if valid_rows is None:
        return x
    row = jax.lax.broadcasted_iota(jnp.int32, x.shape, 0)
    keep = pl.program_id(grid_axis) * x.shape[0] + row < valid_rows
    return jnp.where(keep, x, jnp.zeros((), x.dtype))


def _tri_scan_block(tri, x, *, split, inclusive, need_total):
    """partial = tri @ x with f32 accumulation; optionally also the f32 block total."""
    tl = x.shape[0]
    if split:
        # Non-bf16 input: bf16 hi/lo split fed to the MXU.  NOTE: ~2^-16 relative
        # error within one block (not exact f32); the carry below uses an exact
        # f32 sum so error does not compound across L blocks.
        x32 = x.astype(jnp.float32)
        x_hi = x32.astype(jnp.bfloat16)
        x_lo = (x32 - x_hi.astype(jnp.float32)).astype(jnp.bfloat16)
        partial = jnp.dot(tri, x_hi, preferred_element_type=jnp.float32)
        partial = partial + jnp.dot(tri, x_lo, preferred_element_type=jnp.float32)
        total = jnp.sum(x32, axis=0, keepdims=True) if need_total else None
    else:
        # bf16 input: one MXU pass, f32 accumulation.  The last row of the
        # inclusive prefix matmul is already the exact f32 block total.
        partial = jnp.dot(tri, x, preferred_element_type=jnp.float32)
        total = None
        if need_total:
            total = partial[tl - 1:tl, :]
            if not inclusive:
                total = total + x[tl - 1:tl, :].astype(jnp.float32)
    return partial, total


def _packed_scan_kernel(tri_ref, x_ref, o_ref, *, split, inclusive, valid_rows):
    """Small-L path: each (TL, TF) tile holds whole batches; block-diagonal tri,
    no cross-block carry needed."""
    x = _masked_rows(x_ref[...], 0, valid_rows)
    out, _ = _tri_scan_block(tri_ref[...], x, split=split, inclusive=inclusive,
                             need_total=False)
    o_ref[...] = out.astype(o_ref.dtype)


def _carried_scan_kernel(tri_ref, x_ref, o_ref, carry_ref, *, split, inclusive, valid_l):
    """Large-L path: prefix within the (TL, TF) tile + running f32 carry across L blocks."""
    @pl.when(pl.program_id(2) == 0)
    def _():
        carry_ref[...] = jnp.zeros_like(carry_ref)   # identity == zeros

    x = _masked_rows(x_ref[...], 2, valid_l)
    partial, total = _tri_scan_block(tri_ref[...], x, split=split, inclusive=inclusive,
                                     need_total=True)
    carry = carry_ref[...]                            # (1, TF) f32
    o_ref[...] = (partial + carry).astype(o_ref.dtype)
    carry_ref[...] = carry + total


# ----------------------------------------------------------------------------- wrapper
def blelloch_scan(x, inclusive=True, block_l=None, block_f=None):
    """Additive Blelloch scan (inclusive by default) along axis 1 of x: (B, L, D, N)."""
    B, L, D, N = x.shape
    F = D * N
    dtype = x.dtype
    itemsize = jnp.dtype(dtype).itemsize
    sub = _sublane(dtype)
    gen = _tpu_generation()

    if block_l is None:
        block_l = {"v5e": 128}.get(gen, 256)
    if block_f is None:
        block_f = 2048 if (gen == "v7x" or (gen == "v6e" and F >= 2048)) else 1024
    block_l = max(sub, (block_l // sub) * sub)

    vmem_limit = {"v6e": 64 << 20, "v7x": 48 << 20}.get(gen)
    cp_kwargs = {} if vmem_limit is None else {"vmem_limit_bytes": vmem_limit}

    split = jnp.dtype(dtype) != jnp.dtype(jnp.bfloat16)
    n_passes = 2 if split else 1

    m = (L * sub) // math.gcd(L, sub)     # lcm(L, sub): smallest sublane-aligned row group
    use_packed = m <= block_l             # whole batches fit in one tile -> no carry needed

    if use_packed:
        # ---- small-L fast path: pack G whole batches per tile, block-diagonal tri.
        BL = B * L
        tl = min((block_l // m) * m, _round_up(BL, m))
        G = tl // L
        row_blocks = pl.cdiv(BL, tl)
        tf = _select_tf(F, block_f, row_blocks, gen)
        grid = (row_blocks, pl.cdiv(F, tf))
        valid_rows = None if BL % tl == 0 else BL
        tri = _blockdiag_tri(G, L, inclusive)
        xf = x.reshape(BL, F)             # free reshape, no data movement

        steps = grid[0] * grid[1]
        cost = pl.CostEstimate(
            flops=2 * tl * tl * tf * n_passes * steps,
            transcendentals=0,
            bytes_accessed=2 * BL * F * itemsize + tl * tl * 2)

        out = pl.pallas_call(
            functools.partial(_packed_scan_kernel, split=split, inclusive=inclusive,
                              valid_rows=valid_rows),
            out_shape=jax.ShapeDtypeStruct((BL, F), dtype),
            grid=grid,
            in_specs=[
                pl.BlockSpec((tl, tl), lambda r, f: (0, 0)),     # VMEM-resident tri
                pl.BlockSpec((tl, tf), lambda r, f: (r, f)),
            ],
            out_specs=pl.BlockSpec((tl, tf), lambda r, f: (r, f)),
            compiler_params=pltpu.CompilerParams(
                dimension_semantics=("parallel", "parallel"), **cp_kwargs),
            cost_estimate=cost,
        )(tri, xf)
        return out.reshape(B, L, D, N)

    # ---- large-L path: prefix within L blocks, f32 carry across blocks.
    tl = min(_round_up(L, sub), block_l)
    tf = _select_tf(F, block_f, B, gen)
    grid = (B, pl.cdiv(F, tf), pl.cdiv(L, tl))
    valid_l = None if L % tl == 0 else L
    tri = _blockdiag_tri(1, tl, inclusive)
    xf = x.reshape(B, L, F)               # free reshape

    steps = grid[0] * grid[1] * grid[2]
    cost = pl.CostEstimate(
        flops=2 * tl * tl * tf * n_passes * steps,
        transcendentals=0,
        bytes_accessed=2 * B * L * F * itemsize + tl * tl * 2)

    out = pl.pallas_call(
        functools.partial(_carried_scan_kernel, split=split, inclusive=inclusive,
                          valid_l=valid_l),
        out_shape=jax.ShapeDtypeStruct((B, L, F), dtype),
        grid=grid,
        in_specs=[
            pl.BlockSpec((tl, tl), lambda b, f, l: (0, 0)),       # VMEM-resident tri
            pl.BlockSpec((None, tl, tf), lambda b, f, l: (b, l, f)),
        ],
        out_specs=pl.BlockSpec((None, tl, tf), lambda b, f, l: (b, l, f)),
        scratch_shapes=[pltpu.VMEM((1, tf), jnp.float32)],        # running carry
        compiler_params=pltpu.CompilerParams(
            dimension_semantics=("parallel", "parallel", "arbitrary"), **cp_kwargs),
        cost_estimate=cost,
    )(tri, xf)
    return out.reshape(B, L, D, N)


# ----------------------------------------------------------------------------- tests
if __name__ == "__main__":
    key = jax.random.PRNGKey(0)
    k1, k2, k3 = jax.random.split(key, 3)

    # 1) Primary module shape (B, L, D, N) = (2, 8, 4, 32): small-L packed path.
    x1 = jax.random.normal(k1, (2, 8, 4, 32), dtype=jnp.float32)
    out1 = jax.block_until_ready(jax.jit(blelloch_scan)(x1))
    ref1 = jnp.cumsum(x1, axis=1)
    assert out1.shape == x1.shape
    assert jnp.allclose(out1, ref1, atol=5e-3, rtol=5e-3), "mismatch: packed inclusive"

    # 1b) Exclusive scan on the same shape (identity=zeros).
    out1e = jax.block_until_ready(
        jax.jit(functools.partial(blelloch_scan, inclusive=False))(x1))
    ref1e = ref1 - x1
    assert jnp.allclose(out1e, ref1e, atol=5e-3, rtol=5e-3), "mismatch: packed exclusive"

    # 2) Carried path: several L blocks, ragged L tail (40 % 16 != 0), tiled features.
    x2 = jax.random.normal(k2, (2, 40, 4, 64), dtype=jnp.float32)
    f2 = jax.jit(functools.partial(blelloch_scan, block_l=16, block_f=128))
    out2 = jax.block_until_ready(f2(x2))
    ref2 = jnp.cumsum(x2, axis=1)
    assert out2.shape == x2.shape
    assert jnp.allclose(out2, ref2, atol=5e-3, rtol=5e-3), "mismatch: carried / ragged"

    # 3) bf16 fast path (single MXU pass) + ragged packed rows (B*L = 24, tile = 32).
    x3 = jax.random.normal(k3, (3, 8, 2, 64), dtype=jnp.float32).astype(jnp.bfloat16)
    out3 = jax.block_until_ready(jax.jit(blelloch_scan)(x3))
    ref3 = jnp.cumsum(x3.astype(jnp.float32), axis=1)
    assert out3.shape == x3.shape
    assert jnp.allclose(out3.astype(jnp.float32), ref3, atol=6e-2, rtol=6e-2), \
        "mismatch: bf16 packed"

    print("KERNEL_OK")
</pallas_src>

<mosaic_0001>
module attributes {stable_mosaic.version = 11 : i64} {
  func.func @_packed_scan_kernel(%arg0: i32, %arg1: i32, %arg2: memref<16x16xbf16, #tpu.memory_space<vmem>>, %arg3: memref<16x128xf32, #tpu.memory_space<vmem>>, %arg4: memref<16x128xf32, #tpu.memory_space<vmem>>) attributes {dimension_semantics = [#tpu.dimension_semantics<parallel>, #tpu.dimension_semantics<parallel>], iteration_bounds = array<i64: 1, 1>, scalar_prefetch = 0 : i64, scratch_operands = 0 : i64, tpu.core_type = #tpu.core_type<tc>, window_params = [{pipeline_mode = #tpu.pipeline_mode<synchronous>, transform_indices = @transform_0, window_bounds = array<i64: 16, 16>}, {transform_indices = @transform_1, window_bounds = array<i64: 16, 128>}, {transform_indices = @transform_2, window_bounds = array<i64: 16, 128>}]} {
    %c0 = arith.constant 0 : index
    %c0_0 = arith.constant 0 : index
    %0 = vector.load %arg3[%c0, %c0_0] : memref<16x128xf32, #tpu.memory_space<vmem>>, vector<16x128xf32>
    %c0_1 = arith.constant 0 : index
    %c0_2 = arith.constant 0 : index
    %1 = vector.load %arg2[%c0_1, %c0_2] : memref<16x16xbf16, #tpu.memory_space<vmem>>, vector<16x16xbf16>
    %2 = arith.truncf %0 : vector<16x128xf32> to vector<16x128xbf16>
    %3 = arith.extf %2 : vector<16x128xbf16> to vector<16x128xf32>
    %4 = arith.subf %0, %3 : vector<16x128xf32>
    %5 = arith.truncf %4 : vector<16x128xf32> to vector<16x128xbf16>
    %cst = arith.constant dense<0.000000e+00> : vector<16x128xf32>
    %6 = tpu.matmul %1, %2, %cst {dimension_numbers = #tpu.dot_dimension_numbers<[1], [0], [0], [1], [0, 0, 1, 1], [], []>} : vector<16x16xbf16>, vector<16x128xbf16>, vector<16x128xf32> -> vector<16x128xf32>
    %cst_3 = arith.constant dense<0.000000e+00> : vector<16x128xf32>
    %7 = tpu.matmul %1, %5, %cst_3 {dimension_numbers = #tpu.dot_dimension_numbers<[1], [0], [0], [1], [0, 0, 1, 1], [], []>} : vector<16x16xbf16>, vector<16x128xbf16>, vector<16x128xf32> -> vector<16x128xf32>
    %8 = arith.addf %6, %7 : vector<16x128xf32>
    %c0_4 = arith.constant 0 : index
    %c0_5 = arith.constant 0 : index
    %9 = vector.load %arg4[%c0_4, %c0_5] : memref<16x128xf32, #tpu.memory_space<vmem>>, vector<16x128xf32>
    tpu.vector_store %arg4[%c0_4, %c0_5], %8 {strides = array<i32>} : memref<16x128xf32, #tpu.memory_space<vmem>>, vector<16x128xf32>,
    return
  }
  func.func @transform_0(%arg0: i32, %arg1: i32) -> (i32, i32) {
    %c0_i32 = arith.constant 0 : i32
    %c0_i32_0 = arith.constant 0 : i32
    %c0_i32_1 = arith.constant 0 : i32
    return %c0_i32, %c0_i32_0 : i32, i32
  }
  func.func @transform_1(%arg0: i32, %arg1: i32) -> (i32, i32) {
    %c0_i32 = arith.constant 0 : i32
    return %arg0, %arg1 : i32, i32
  }
  func.func @transform_2(%arg0: i32, %arg1: i32) -> (i32, i32) {
    %c0_i32 = arith.constant 0 : i32
    return %arg0, %arg1 : i32, i32
  }
}

</mosaic_0001>

<bundles_post_ra>
// kernel: blelloch_scan.1
= control target key start
LH: loop header
LB: loop body
LE: loop exit
PB: predicated region body
PF: predicated region fallthrough
CT: control target
= control target key end

     0   :  { %v143_v0 = vmov 0.0   ;;  %vm144_vm0 = vmmov 0   ;;  %vm27_vm1 = vcmask 130048   ;;  %s175_s1 = inlined_call_operand.vmem [shape: f32[16,128], index: 1, kind: input, shape index: {}]   ;;  %s176_s0 = inlined_call_operand.vmem [shape: bf16[16,16], index: 0, kind: input, shape index: {}]   ;;  %s177_s2 = inlined_call_operand.vmem [shape: f32[16,128], index: 2, kind: output, shape index: {}]  }
   0x1   :  { %132 = vmatprep.subr.bf16.mxu0 %v143_v0  ;;  %v12_v1 = vld [vmem:[%s175_s1] sm:$0xff]  ;;  %v13_v2 = vld [vmem:[%s175_s1 + $0x8] sm:$0xff]  ;;  %126 = vmatprep.subr.bf16.mxu1 %v143_v0 }
   0x2   :  { %v16_v3 = vpack.c.bf16 %v13_v2, %v12_v1  ;;  %134 = vmatprep.mubr.msk.bf16.mxu0 %vm144_vm0, %v143_v0  ;;  %128 = vmatprep.mubr.msk.bf16.mxu1 %vm144_vm0, %v143_v0  ;;  %v142_v4 = vld [vmem:[%s176_s0] sm:$0xff]  }
   0x4   :  { %133 = vmatpush3.bf16.msra.mxu0 %v16_v3  ;;  %v17_v5 = vunpack.c.l.bf16 %v16_v3  ;;  %v18_v6 = vunpack.c.h.bf16 %v16_v3 }
   0x6   :  { %v19_v7 = vsub.f32 %v12_v1, %v17_v5  ;;  %v20_v8 = vsub.f32 %v13_v2, %v18_v6 }
   0x7   :  { %135 = vmatmul.mubr.msk.bf16.vlgmr.msra.gmra.mrb[0].mxu0 %vm27_vm1, %v142_v4 }
   0x8   :  { %v21_v9 = vpack.c.bf16 %v20_v8, %v19_v7 }
   0xa   :  { %127 = vmatpush3.bf16.msra.mxu1 %v21_v9 }
   0xd   :  { %129 = vmatmul.mubr.msk.bf16.vlgmr.msra.gmra.mrb[0].mxu1 %vm27_vm1, %v142_v4 }
  0xda   :  { %v106_v10 = vpop.f32.mrb[0].mxu0 }
  0xdb   :  { %v136_v11 = vpop.f32.mrb[1].mxu0 }
  0xdc   :  { %v109_v12 = vpop.f32.mrb[2].mxu0 }
  0xdd   :  { %v137_v13 = vpop.f32.mrb[3].mxu0 }
  0xe0   :  { %v65_v14 = vpop.f32.mrb[0].mxu1 }
  0xe1   :  { %v107_v15 = vadd.f32 %v106_v10, %v65_v14  ;;  %v130_v16 = vpop.f32.mrb[1].mxu1 }
  0xe2   :  { %v68_v17 = vpop.f32.mrb[2].mxu1 }
  0xe3   :  { %113 = vst [vmem:[%s177_s2] sm:$0xff] %v107_v15  ;;  %v110_v18 = vadd.f32 %v109_v12, %v68_v17  ;;  %v131_v19 = vpop.f32.mrb[3].mxu1 }
  0xe5   :  { %114 = vst [vmem:[%s177_s2 + $0x8] sm:$0xff] %v110_v18 }

</bundles_post_ra>
